<compile_context>
chip_gen: v7x
topology: tpu7x:2x2x1
jax: 0.10.0
libtpu: 0.0.40
codegen_flags: <defaults>
</compile_context>

<pallas_src>
import jax
import jax.numpy as jnp
from jax.experimental import pallas as pl
from jax.experimental.pallas import tpu as pltpu

_LANE = 128      # lane pad for every feature / class dim
_NEG = -1e30     # mask value for non-edges / padded classes (Python float!)
_SLOPE = 0.2     # LeakyReLU negative slope (PyG default)


def _round_up(v, m):
    return ((v + m - 1) // m) * m


# ----------------------------- Pallas kernels --------------------------------

def _proj_kernel(x_ref, w_ref, asrc_ref, h_ref, s_ref):
    """H1 = X @ W1 (bf16 MXU, f32 acc). Also emits hoisted source score
    s1_i = a1_src . H1_i so downstream attention tiles never recompute it."""
    x = x_ref[...].astype(jnp.bfloat16)
    h = jnp.dot(x, w_ref[...], preferred_element_type=jnp.float32)     # [tile, fe]
    s_ref[...] = jnp.sum(h * asrc_ref[...], axis=-1, keepdims=True)    # [tile, 1]
    h_ref[...] = h.astype(jnp.bfloat16)


def _gat_attention(adj_ref, h_ref, s_ref, adst_ref, b_ref, tile):
    """One GAT head for a block of `tile` destination nodes.

    adj_ref: [tile, N] int8 mask (dst, src), self loops included.
    h_ref:   [N, F]    bf16 projected features (resident across dst grid).
    s_ref:   [1, N]    f32 hoisted per-source scores a_src . H_j.
    returns  [tile, F] f32 aggregated features (+ bias).
    """
    i = pl.program_id(0)
    row0 = pl.multiple_of(i * tile, tile)

    h_blk = h_ref[pl.ds(row0, tile), :].astype(jnp.float32)            # [tile, F]
    mask = adj_ref[...] > 0                                            # [tile, N]

    # Only the cheap per-tile destination score remains in the loop.
    d = jnp.sum(h_blk * adst_ref[...], axis=-1, keepdims=True)         # [tile, 1]

    # e[i, j] = LeakyReLU(d_i + s_j); masked row-wise softmax over sources j.
    e = d + s_ref[...]                                                 # [tile, N]
    e = jnp.where(e > 0, e, _SLOPE * e)
    e = jnp.where(mask, e, _NEG)
    m = jnp.max(e, axis=-1, keepdims=True)
    p = jnp.exp(e - m)                                                 # ~0 when masked
    denom = jnp.sum(p, axis=-1, keepdims=True)                         # >= 1 (self loops)
    alpha = p * (1.0 / denom)                                          # exact (parity)

    # Aggregation GEMM in bf16 with f32 accumulation on the MXU (H is bf16 resident).
    agg = jnp.dot(alpha.astype(jnp.bfloat16), h_ref[...],
                  preferred_element_type=jnp.float32)
    return agg + b_ref[...]                                            # [tile, F]


def _gat1_kernel(adj_ref, h_ref, s_ref, adst_ref, b_ref, a2src_ref, w2_ref,
                 h2_ref, s2_ref):
    """conv1 attention + ReLU (dropout == identity) + fused conv2 projection.
    Also emits the hoisted source score for layer 2."""
    tile = h2_ref.shape[0]
    agg = _gat_attention(adj_ref, h_ref, s_ref, adst_ref, b_ref, tile)
    act = jnp.maximum(agg, 0.0)
    h2 = jnp.dot(act.astype(jnp.bfloat16), w2_ref[...],
                 preferred_element_type=jnp.float32)                   # [tile, fh]
    s2_ref[...] = jnp.sum(h2 * a2src_ref[...], axis=-1, keepdims=True)
    h2_ref[...] = h2.astype(jnp.bfloat16)


def _gat2_kernel(adj_ref, h_ref, s_ref, adst_ref, b_ref, wc_ref, bc_ref, out_ref):
    """conv2 attention + fused classifier + log_softmax over lane-padded classes."""
    tile = out_ref.shape[0]
    agg = _gat_attention(adj_ref, h_ref, s_ref, adst_ref, b_ref, tile)
    logits = jnp.dot(agg.astype(jnp.bfloat16), wc_ref[...],
                     preferred_element_type=jnp.float32) + bc_ref[...]
    # padded class columns carry bias -1e30, so they vanish from the softmax
    m = jnp.max(logits, axis=-1, keepdims=True)
    z = logits - m
    lse = jnp.log(jnp.sum(jnp.exp(z), axis=-1, keepdims=True))
    out_ref[...] = (z - lse).astype(out_ref.dtype)


# ------------------------------ wrapper --------------------------------------

def gnn_forward(x, adj, params, *, tile=128):
    """x: [N, F_in] f32, adj: [N, N] {0,1} mask (dst, src). Returns [N, C] log-probs."""
    N, f_in = x.shape
    f_edge = params["w1"].shape[1]
    f_hidden = params["w2"].shape[1]
    n_classes = params["wc"].shape[1]

    tile = min(_round_up(tile, 8), _round_up(N, 8))
    n_pad = _round_up(N, tile)
    fi = _round_up(f_in, _LANE)
    fe = _round_up(f_edge, _LANE)
    fh = _round_up(f_hidden, _LANE)
    fc = _round_up(n_classes, _LANE)
    n_tiles = n_pad // tile

    # lane/row padding (zero pad; classifier-bias pad = -1e30 so log_softmax ignores it)
    xp = jnp.zeros((n_pad, fi), jnp.float32).at[:N, :f_in].set(x)
    adj_i8 = jnp.zeros((n_pad, n_pad), jnp.int8).at[:N, :N].set(
        (adj > 0).astype(jnp.int8))

    def padf(a, shape):  # f32 padded (bias / attention vectors)
        return jnp.zeros(shape, jnp.float32).at[:a.shape[0], :a.shape[1]].set(a)

    def padb(a, shape):  # bf16 padded (MXU weights, cast once here not per tile)
        return padf(a, shape).astype(jnp.bfloat16)

    w1 = padb(params["w1"], (fi, fe))
    a1s = padf(params["a1_src"].reshape(1, -1), (1, fe))
    a1d = padf(params["a1_dst"].reshape(1, -1), (1, fe))
    b1 = padf(params["b1"], (1, fe))
    w2 = padb(params["w2"], (fe, fh))
    a2s = padf(params["a2_src"].reshape(1, -1), (1, fh))
    a2d = padf(params["a2_dst"].reshape(1, -1), (1, fh))
    b2 = padf(params["b2"], (1, fh))
    wc = padb(params["wc"], (fh, fc))
    bc = jnp.full((1, fc), _NEG, jnp.float32).at[:, :n_classes].set(params["bc"][0])

    parallel = pltpu.CompilerParams(
        dimension_semantics=("parallel",),
        vmem_limit_bytes=64 * 1024 * 1024)

    def resident(shape):
        nd = len(shape)
        return pl.BlockSpec(shape, lambda i, _n=nd: (0,) * _n)

    def row_tiled(cols):
        return pl.BlockSpec((tile, cols), lambda i: (i, 0))

    col_out = pl.BlockSpec((tile, 1), lambda i: (i, 0))

    def gat_cost(f_src, f_dst):
        return pl.CostEstimate(
            flops=2 * n_pad * n_pad * f_src + 2 * n_pad * f_src * f_dst
                  + 8 * n_pad * n_pad,
            transcendentals=n_pad * n_pad,
            bytes_accessed=n_pad * n_pad                 # int8 adjacency stream
                           + 2 * n_pad * f_src           # bf16 resident H
                           + 2 * n_pad * f_dst           # bf16 output H / f32 logp
                           + 2 * f_src * f_dst)          # bf16 weights

    # ---- pass 1: H1 = X @ W1 (row tiled) + hoisted s1 -------------------------
    h1, s1col = pl.pallas_call(
        _proj_kernel,
        out_shape=(jax.ShapeDtypeStruct((n_pad, fe), jnp.bfloat16),
                   jax.ShapeDtypeStruct((n_pad, 1), jnp.float32)),
        grid=(n_tiles,),
        in_specs=[row_tiled(fi), resident((fi, fe)), resident((1, fe))],
        out_specs=(row_tiled(fe), col_out),
        compiler_params=parallel,
        cost_estimate=pl.CostEstimate(
            flops=2 * n_pad * fi * fe, transcendentals=0,
            bytes_accessed=4 * n_pad * fi + 2 * fi * fe + 2 * n_pad * fe),
    )(xp, w1, a1s)
    s1 = s1col.reshape(1, n_pad)        # contiguous reshape, no transpose in-kernel

    # ---- pass 2: conv1 attention + ReLU + fused conv2 projection (+ s2) -------
    h2, s2col = pl.pallas_call(
        _gat1_kernel,
        out_shape=(jax.ShapeDtypeStruct((n_pad, fh), jnp.bfloat16),
                   jax.ShapeDtypeStruct((n_pad, 1), jnp.float32)),
        grid=(n_tiles,),
        in_specs=[row_tiled(n_pad),          # adjacency dst-tile (int8)
                  resident((n_pad, fe)),     # H1 resident (bf16)
                  resident((1, n_pad)),      # hoisted source scores s1
                  resident((1, fe)),         # a1_dst
                  resident((1, fe)),         # b1
                  resident((1, fh)),         # a2_src (for the fused s2)
                  resident((fe, fh))],       # W2 (bf16)
        out_specs=(row_tiled(fh), col_out),
        compiler_params=parallel,
        cost_estimate=gat_cost(fe, fh),
    )(adj_i8, h1, s1, a1d, b1, a2s, w2)
    s2 = s2col.reshape(1, n_pad)

    # ---- pass 3: conv2 attention + fused classifier + log_softmax -------------
    logp = pl.pallas_call(
        _gat2_kernel,
        out_shape=jax.ShapeDtypeStruct((n_pad, fc), jnp.float32),
        grid=(n_tiles,),
        in_specs=[row_tiled(n_pad),
                  resident((n_pad, fh)),     # H2 resident (bf16)
                  resident((1, n_pad)),      # hoisted source scores s2
                  resident((1, fh)),         # a2_dst
                  resident((1, fh)),         # b2
                  resident((fh, fc)),        # WC (bf16)
                  resident((1, fc))],        # classifier bias (padded with -1e30)
        out_specs=row_tiled(fc),
        compiler_params=parallel,
        cost_estimate=gat_cost(fh, fc),
    )(adj_i8, h2, s2, a2d, b2, wc, bc)

    return logp[:N, :n_classes]


# ----------------------------- param / graph setup ---------------------------

def init_params(key, f_in, f_edge, f_hidden, n_classes):
    ks = jax.random.split(key, 8)

    def glorot(k, shape):
        fan_in, fan_out = shape[0], shape[-1]
        lim = (6.0 / (fan_in + fan_out)) ** 0.5
        return jax.random.uniform(k, shape, jnp.float32, -lim, lim)

    return {
        # GATConv(f_in -> f_edge)
        "w1": glorot(ks[0], (f_in, f_edge)),
        "a1_src": glorot(ks[1], (f_edge, 1)),
        "a1_dst": glorot(ks[2], (f_edge, 1)),
        "b1": jnp.zeros((1, f_edge), jnp.float32),
        # GATConv(f_edge -> f_hidden)
        "w2": glorot(ks[3], (f_edge, f_hidden)),
        "a2_src": glorot(ks[4], (f_hidden, 1)),
        "a2_dst": glorot(ks[5], (f_hidden, 1)),
        "b2": jnp.zeros((1, f_hidden), jnp.float32),
        # Linear(f_hidden -> n_classes)
        "wc": glorot(ks[6], (f_hidden, n_classes)),
        "bc": jnp.zeros((1, n_classes), jnp.float32),
    }


def build_adjacency(key, n_nodes, n_edges):
    """Random directed edges + self loops -> dense mask A[dst, src]."""
    k_src, k_dst = jax.random.split(key)
    src = jax.random.randint(k_src, (n_edges,), 0, n_nodes)
    dst = jax.random.randint(k_dst, (n_edges,), 0, n_nodes)
    adj = jnp.zeros((n_nodes, n_nodes), jnp.float32)
    adj = adj.at[dst, src].set(1.0)
    adj = adj.at[jnp.arange(n_nodes), jnp.arange(n_nodes)].set(1.0)  # self loops
    return adj


# --------------------------------- main ---------------------------------------

if __name__ == "__main__":
    # small synthetic "dataset": 128 nodes, 8 node features, 8 edge features,
    # hidden 16, 4 classes (edge_attr unused by GATConv without edge_dim).
    N, F_IN, F_EDGE, F_HIDDEN, N_CLASSES, N_EDGES = 128, 8, 8, 16, 4, 512

    root = jax.random.PRNGKey(0)
    k_x, k_g, k_p = jax.random.split(root, 3)

    x = jax.random.normal(k_x, (N, F_IN), jnp.float32)
    adj = build_adjacency(k_g, N, N_EDGES)
    params = init_params(k_p, F_IN, F_EDGE, F_HIDDEN, N_CLASSES)

    out = jax.block_until_ready(gnn_forward(x, adj, params))

    assert out.shape == (N, N_CLASSES)
    assert bool(jnp.all(jnp.isfinite(out)))
    # log-softmax rows must exponentiate-sum to ~1
    row_sums = jnp.sum(jnp.exp(out), axis=1)
    assert bool(jnp.all(jnp.abs(row_sums - 1.0) < 1e-3))

    print("KERNEL_OK")
</pallas_src>

<mosaic_0001>
module attributes {stable_mosaic.version = 11 : i64} {
  func.func @_proj_kernel(%arg0: i32, %arg1: memref<128x128xf32, #tpu.memory_space<vmem>>, %arg2: memref<128x128xbf16, #tpu.memory_space<vmem>>, %arg3: memref<1x128xf32, #tpu.memory_space<vmem>>, %arg4: memref<128x128xbf16, #tpu.memory_space<vmem>>, %arg5: memref<128x1xf32, #tpu.memory_space<vmem>>) attributes {dimension_semantics = [#tpu.dimension_semantics<parallel>], iteration_bounds = array<i64: 1>, scalar_prefetch = 0 : i64, scratch_operands = 0 : i64, tpu.core_type = #tpu.core_type<tc>, window_params = [{transform_indices = @transform_0, window_bounds = array<i64: 128, 128>}, {pipeline_mode = #tpu.pipeline_mode<synchronous>, transform_indices = @transform_1, window_bounds = array<i64: 128, 128>}, {pipeline_mode = #tpu.pipeline_mode<synchronous>, transform_indices = @transform_2, window_bounds = array<i64: 1, 128>}, {transform_indices = @transform_3, window_bounds = array<i64: 128, 128>}, {transform_indices = @transform_4, window_bounds = array<i64: 128, 1>}]} {
    %c0 = arith.constant 0 : index
    %c0_0 = arith.constant 0 : index
    %0 = vector.load %arg1[%c0, %c0_0] : memref<128x128xf32, #tpu.memory_space<vmem>>, vector<128x128xf32>
    %1 = arith.truncf %0 : vector<128x128xf32> to vector<128x128xbf16>
    %c0_1 = arith.constant 0 : index
    %c0_2 = arith.constant 0 : index
    %2 = vector.load %arg2[%c0_1, %c0_2] : memref<128x128xbf16, #tpu.memory_space<vmem>>, vector<128x128xbf16>
    %cst = arith.constant dense<0.000000e+00> : vector<128x128xf32>
    %3 = tpu.matmul %1, %2, %cst {dimension_numbers = #tpu.dot_dimension_numbers<[1], [0], [0], [1], [0, 0, 1, 1], [], []>} : vector<128x128xbf16>, vector<128x128xbf16>, vector<128x128xf32> -> vector<128x128xf32>
    %c0_3 = arith.constant 0 : index
    %c0_4 = arith.constant 0 : index
    %4 = vector.load %arg3[%c0_3, %c0_4] : memref<1x128xf32, #tpu.memory_space<vmem>>, vector<1x128xf32>
    %5 = vector.broadcast %4 : vector<1x128xf32> to vector<128x128xf32>
    %6 = arith.mulf %3, %5 : vector<128x128xf32>
    %cst_5 = arith.constant dense<0.000000e+00> : vector<128xf32>
    %7 = vector.multi_reduction <add>, %6, %cst_5 [1] : vector<128x128xf32> to vector<128xf32>
    %8 = vector.shape_cast %7 : vector<128xf32> to vector<128x1xf32>
    %c0_6 = arith.constant 0 : index
    %c0_7 = arith.constant 0 : index
    %9 = vector.load %arg5[%c0_6, %c0_7] : memref<128x1xf32, #tpu.memory_space<vmem>>, vector<128x1xf32>
    tpu.vector_store %arg5[%c0_6, %c0_7], %8 {strides = array<i32>} : memref<128x1xf32, #tpu.memory_space<vmem>>, vector<128x1xf32>,
    %10 = arith.truncf %3 : vector<128x128xf32> to vector<128x128xbf16>
    %c0_8 = arith.constant 0 : index
    %c0_9 = arith.constant 0 : index
    %11 = vector.load %arg4[%c0_8, %c0_9] : memref<128x128xbf16, #tpu.memory_space<vmem>>, vector<128x128xbf16>
    tpu.vector_store %arg4[%c0_8, %c0_9], %10 {strides = array<i32>} : memref<128x128xbf16, #tpu.memory_space<vmem>>, vector<128x128xbf16>,
    return
  }
  func.func @transform_0(%arg0: i32) -> (i32, i32) {
    %c0_i32 = arith.constant 0 : i32
    %c0_i32_0 = arith.constant 0 : i32
    return %arg0, %c0_i32 : i32, i32
  }
  func.func @transform_1(%arg0: i32) -> (i32, i32) {
    %c0_i32 = arith.constant 0 : i32
    %c0_i32_0 = arith.constant 0 : i32
    %c0_i32_1 = arith.constant 0 : i32
    return %c0_i32, %c0_i32_0 : i32, i32
  }
  func.func @transform_2(%arg0: i32) -> (i32, i32) {
    %c0_i32 = arith.constant 0 : i32
    %c0_i32_0 = arith.constant 0 : i32
    %c0_i32_1 = arith.constant 0 : i32
    return %c0_i32, %c0_i32_0 : i32, i32
  }
  func.func @transform_3(%arg0: i32) -> (i32, i32) {
    %c0_i32 = arith.constant 0 : i32
    %c0_i32_0 = arith.constant 0 : i32
    return %arg0, %c0_i32 : i32, i32
  }
  func.func @transform_4(%arg0: i32) -> (i32, i32) {
    %c0_i32 = arith.constant 0 : i32
    %c0_i32_0 = arith.constant 0 : i32
    return %arg0, %c0_i32 : i32, i32
  }
}

</mosaic_0001>

<bundles_post_ra>
// kernel: tpu_custom_call.1
= control target key start
LH: loop header
LB: loop body
LE: loop exit
PB: predicated region body
PF: predicated region fallthrough
CT: control target
= control target key end

     0   :  { %10 = vsyncpa [#allocation3], 0  ;;  %s838_s0 = inlined_call_operand.hbm [shape: f32[128,128], index: 0, kind: input, shape index: {}]   ;;  %s839_s1 = inlined_call_operand.hbm [shape: bf16[128,128], index: 1, kind: input, shape index: {}]   ;;  %s840_s2 = inlined_call_operand.hbm [shape: f32[1,128], index: 2, kind: input, shape index: {}]   ;;  %s841_s3 = inlined_call_operand.hbm [shape: bf16[128,128], index: 3, kind: output, shape index: {0}]   ;;  %s842_s4 = inlined_call_operand.hbm [shape: f32[128,1], index: 4, kind: output, shape index: {1}]  }
   0x1   :  { %11 = vsyncpa [#allocation6], 0 }
   0x2   :  { %12 = vsyncpa [#allocation4], 0 }
   0x3   :  { %13 = vsyncpa [#allocation10], 0  ;;  %s716_s15 = smov [#allocation5]   ;;  %s598_s19 = scalar_lea.hbm %s839_s1, 1024 }
   0x4   :  { %s31_s16 = sshll.u32 %s716_s15, 4  ;;  %p599_p0 = scmp.ne.s32.totalorder %s839_s1, %s598_s19  ;;  %s32_s16 = int_to_ptr.vmem [resolvable:$true] %s31_s16 }
   0x5   :  { %p602_p1 = scmp.lt.u32.totalorder %s598_s19, %s839_s1 }
   0x7   :  { %p604_p2 = pnand %p602_p1, %p599_p0 }
   0x9   :  { %607 = shalt.err (!%p604_p2)
}
   0xa   :  { %s608_s24 = scalar_lea.vmem %s32_s16, 1024  ;;  %p613_p4 = scmp.lt.s32.totalorder %s32_s16, %s32_s16 }
   0xb   :  { %p609_p3 = scmp.ne.s32.totalorder %s32_s16, %s608_s24  ;;  %p614_p5 = scmp.lt.s32.totalorder %s608_s24, %s608_s24 }
   0xd   :  { %p615_p6 = por %p614_p5, %p613_p4 }
   0xf   :  { %p616_p7 = pnand %p615_p6, %p609_p3 }
  0x11   :  { %619 = shalt.err (!%p616_p7)
}
  0x12   :  { %s717_s25 = smov 64   ;;  %s718_s26 = smov 4  }
  0x13   :  { %37 = dma.hbm_to_vmem [thread:$0]  %s839_s1, 1024, %s32_s16, [#allocation6], %s717_s25, %s717_s25, %s718_s26  }
  0x14   :  { %s719_s29 = smov [#allocation2]   ;;  %s620_s7 = scalar_lea.hbm %s838_s0, 2048 }
  0x15   :  { %s19_s30 = sshll.u32 %s719_s29, 4  ;;  %p621_p8 = scmp.ne.s32.totalorder %s838_s0, %s620_s7  ;;  %s20_s30 = int_to_ptr.vmem [resolvable:$true] %s19_s30 }
  0x16   :  { %p624_p9 = scmp.lt.u32.totalorder %s620_s7, %s838_s0 }
  0x18   :  { %p626_p10 = pnand %p624_p9, %p621_p8 }
  0x1a   :  { %629 = shalt.err (!%p626_p10)
}
  0x1b   :  { %s630_s12 = scalar_lea.vmem %s20_s30, 2048  ;;  %p635_p12 = scmp.lt.s32.totalorder %s20_s30, %s20_s30 }
  0x1c   :  { %p631_p11 = scmp.ne.s32.totalorder %s20_s30, %s630_s12  ;;  %p636_p13 = scmp.lt.s32.totalorder %s630_s12, %s630_s12 }
  0x1e   :  { %p637_p0 = por %p636_p13, %p635_p12 }
  0x20   :  { %p638_p1 = pnand %p637_p0, %p631_p11 }
  0x22   :  { %641 = shalt.err (!%p638_p1)
}
  0x23   :  { %s720_s1 = smov 128   ;;  %s721_s13 = smov 8  }
  0x24   :  { %25 = dma.hbm_to_vmem [thread:$0]  %s838_s0, 2048, %s20_s30, [#allocation3], %s720_s1, %s720_s1, %s721_s13  }
  0x25   :  { %s722_s16 = smov [#allocation7]   ;;  %s642_s20 = scalar_lea.hbm %s840_s2, 16 }
  0x26   :  { %s44_s17 = sshll.u32 %s722_s16, 4  ;;  %p643_p2 = scmp.ne.s32.totalorder %s840_s2, %s642_s20  ;;  %s45_s17 = int_to_ptr.vmem [resolvable:$true] %s44_s17 }
  0x27   :  { %p646_p3 = scmp.lt.u32.totalorder %s642_s20, %s840_s2 }
  0x29   :  { %p648_p4 = pnand %p646_p3, %p643_p2 }
  0x2b   :  { %651 = shalt.err (!%p648_p4)
}
  0x2c   :  { %s652_s27 = scalar_lea.vmem %s45_s17, 16  ;;  %s656_s0 = scalar_lea.vmem %s45_s17, 32 }
  0x2d   :  { %p653_p5 = scmp.ne.s32.totalorder %s45_s17, %s652_s27  ;;  %p657_p6 = scmp.lt.s32.totalorder %s45_s17, %s45_s17 }
  0x2e   :  { %p658_p7 = scmp.lt.s32.totalorder %s656_s0, %s652_s27 }
  0x30   :  { %p659_p8 = por %p658_p7, %p657_p6 }
  0x32   :  { %p660_p9 = pnand %p659_p8, %p653_p5 }
  0x34   :  { %663 = shalt.err (!%p660_p9)
}
  0x35   :  { %47 = dma.hbm_to_vmem [thread:$0]  %s840_s2, 16, %s45_s17, [#allocation6]  }
  0x36   :  { %708 = dma.done.wait [#allocation3], 2048  }
  0x37   :  { %709 = vsyncadd [#allocation3], 4294965248 }
  0x38   :  { %710 = dma.done.wait [#allocation6], 1040  }
  0x39   :  { %711 = vsyncadd [#allocation6], 4294966256  ;;  %v590_v0 = vld [vmem:[#allocation5] sm:$0xff]   ;;  %v591_v1 = vld [vmem:[#allocation5 + $0x8] sm:$0xff]   ;;  %s723_s2 = smov [#allocation8]  }
  0x3a   :  { %533 = vmatprep.subr.bf16.mxu0 %v590_v0  ;;  %565 = vmatprep.subr.bf16.mxu1 %v590_v0  ;;  %v592_v2 = vld [vmem:[#allocation5 + $0x10] sm:$0xff]   ;;  %v593_v3 = vld [vmem:[#allocation5 + $0x18] sm:$0xff]   ;;  %v58_v4 = vld [vmem:[#allocation2] sm:$0xff]  ;;  %s400_s30 = sshll.u32 %s723_s2, 4  ;;  %s401_s30 = int_to_ptr.vmem [resolvable:$true] %s400_s30 }
  0x3b   :  { %534 = vmatpush3.bf16.msra.mxu0 %v590_v0  ;;  %573 = vmatpush3.bf16.msra.mxu1 %v590_v0  ;;  %v59_v5 = vld [vmem:[#allocation2 + $0x8] sm:$0xff]  ;;  %v66_v6 = vld [vmem:[#allocation2 + $0x40] sm:$0xff]  ;;  %v596_v12 = vld [vmem:[#allocation5 + $0x30] sm:$0xff]   ;;  %s664_s5 = scalar_lea.vmem %s401_s30, 1024  ;;  %p669_p11 = scmp.lt.s32.totalorder %s401_s30, %s401_s30 }
  0x3c   :  { %535 = vmatprep.subr.bf16.mxu0 %v591_v1  ;;  %566 = vmatprep.subr.bf16.mxu1 %v591_v1  ;;  %v74_v7 = vpack.c.bf16 %v59_v5, %v58_v4  ;;  %v67_v8 = vld [vmem:[#allocation2 + $0x48] sm:$0xff]  ;;  %v594_v10 = vld [vmem:[#allocation5 + $0x20] sm:$0xff]   ;;  %v597_v13 = vld [vmem:[#allocation5 + $0x38] sm:$0xff]   ;;  %p665_p10 = scmp.ne.s32.totalorder %s401_s30, %s664_s5  ;;  %p670_p12 = scmp.lt.s32.totalorder %s664_s5, %s664_s5 }
  0x3d   :  { %v78_v9 = vpack.c.bf16 %v67_v8, %v66_v6  ;;  %v595_v11 = vld [vmem:[#allocation5 + $0x28] sm:$0xff]   ;;  %v60_v14 = vld [vmem:[#allocation2 + $0x10] sm:$0xff]  ;;  %v61_v15 = vld [vmem:[#allocation2 + $0x18] sm:$0xff] }
  0x3e   :  { %549 = vmatprep.mubr.bf16.mxu0 %v74_v7  ;;  %v68_v16 = vld [vmem:[#allocation2 + $0x50] sm:$0xff]  ;;  %v69_v17 = vld [vmem:[#allocation2 + $0x58] sm:$0xff]  ;;  %v62_v18 = vld [vmem:[#allocation2 + $0x20] sm:$0xff]  ;;  %v75_v22 = vpack.c.bf16 %v61_v15, %v60_v14  ;;  %p671_p13 = por %p670_p12, %p669_p11 }
  0x3f   :  { %536 = vmatpush3.bf16.msra.mxu0 %v591_v1  ;;  %574 = vmatpush3.bf16.msra.mxu1 %v591_v1  ;;  %v63_v19 = vld [vmem:[#allocation2 + $0x28] sm:$0xff]  ;;  %v70_v20 = vld [vmem:[#allocation2 + $0x60] sm:$0xff]  ;;  %v79_v23 = vpack.c.bf16 %v69_v17, %v68_v16  ;;  %v64_v26 = vld [vmem:[#allocation2 + $0x30] sm:$0xff] }
  0x40   :  { %537 = vmatprep.subr.bf16.mxu0 %v592_v2  ;;  %567 = vmatprep.subr.bf16.mxu1 %v592_v2  ;;  %v71_v21 = vld [vmem:[#allocation2 + $0x68] sm:$0xff]  ;;  %v76_v24 = vpack.c.bf16 %v63_v19, %v62_v18  ;;  %v65_v27 = vld [vmem:[#allocation2 + $0x38] sm:$0xff]  ;;  %v72_v28 = vld [vmem:[#allocation2 + $0x70] sm:$0xff]  ;;  %p672_p0 = pnand %p671_p13, %p665_p10 }
  0x41   :  { %557 = vmatprep.mubr.bf16.mxu1 %v78_v9  ;;  %v80_v25 = vpack.c.bf16 %v71_v21, %v70_v20  ;;  %v73_v29 = vld [vmem:[#allocation2 + $0x78] sm:$0xff]  ;;  %v77_v30 = vpack.c.bf16 %v65_v27, %v64_v26  ;;  %v437_v32 = vld [vmem:[#allocation7] ss:$0 sm:$0xff] }
  0x42   :  { %v81_v31 = vpack.c.bf16 %v73_v29, %v72_v28 }
  0x43   :  { %538 = vmatpush3.bf16.msra.mxu0 %v592_v2  ;;  %575 = vmatpush3.bf16.msra.mxu1 %v592_v2 }
  0x44   :  { %539 = vmatprep.subr.bf16.mxu0 %v593_v3  ;;  %568 = vmatprep.subr.bf16.mxu1 %v593_v3 }
  0x47   :  { %540 = vmatpush3.bf16.msra.mxu0 %v593_v3  ;;  %576 = vmatpush3.bf16.msra.mxu1 %v593_v3 }
  0x48   :  { %541 = vmatprep.subr.bf16.mxu0 %v594_v10  ;;  %569 = vmatprep.subr.bf16.mxu1 %v594_v10 }
  0x4b   :  { %542 = vmatpush3.bf16.msra.mxu0 %v594_v10  ;;  %577 = vmatpush3.bf16.msra.mxu1 %v594_v10 }
  0x4c   :  { %543 = vmatprep.subr.bf16.mxu0 %v595_v11  ;;  %570 = vmatprep.subr.bf16.mxu1 %v595_v11 }
  0x4f   :  { %544 = vmatpush3.bf16.msra.mxu0 %v595_v11  ;;  %578 = vmatpush3.bf16.msra.mxu1 %v595_v11 }
  0x50   :  { %545 = vmatprep.subr.bf16.mxu0 %v596_v12  ;;  %571 = vmatprep.subr.bf16.mxu1 %v596_v12 }
  0x53   :  { %546 = vmatpush3.bf16.msra.mxu0 %v596_v12  ;;  %579 = vmatpush3.bf16.msra.mxu1 %v596_v12 }
  0x54   :  { %547 = vmatprep.subr.bf16.mxu0 %v597_v13  ;;  %572 = vmatprep.subr.bf16.mxu1 %v597_v13 }
  0x57   :  { %548 = vmatpush3.bf16.msra.mxu0 %v597_v13  ;;  %580 = vmatpush3.bf16.msra.mxu1 %v597_v13 }
  0x5a   :  { %550 = vmatmul.mubr.bf16.vlgmr.msra.gmra.mrb[0].mxu0 %v75_v22  ;;  %558 = vmatmul.mubr.bf16.vlgmr.msra.gmra.mrb[0].mxu1 %v79_v23 }
  0x5b   :  { %553 = vmatprep.mubr.bf16.mxu0 %v76_v24  ;;  %561 = vmatprep.mubr.bf16.mxu1 %v80_v25 }
  0x62   :  { %554 = vmatmul.mubr.bf16.gmra.mrb[4].mxu0 %v77_v30  ;;  %562 = vmatmul.mubr.bf16.gmra.mrb[4].mxu1 %v81_v31 }
 0x12d   :  { %v551_v33 = vpop.f32.mrb[0].mxu0  ;;  %v559_v34 = vpop.f32.mrb[0].mxu1 }
 0x12e   :  { %v180_v35 = vpop.f32.mrb[1].mxu0  ;;  %v212_v36 = vpop.f32.mrb[1].mxu1  ;;  %v260_v37 = vmul.f32 %v559_v34, %v437_v32  ;;  %v252_v38 = vmul.f32 %v551_v33, %v437_v32 }
 0x12f   :  { %v552_v39 = vpop.f32.mrb[2].mxu0  ;;  %v560_v40 = vpop.f32.mrb[2].mxu1  ;;  %v250_v47 = vmul.f32 %v437_v32, %v180_v35  ;;  %v258_v51 = vmul.f32 %v437_v32, %v212_v36 }
 0x130   :  { %v478_v41 = vpack.c.bf16 %v552_v39, %v551_v33  ;;  %v498_v42 = vpack.c.bf16 %v560_v40, %v559_v34  ;;  %286 = vadd.xlane.f32.xlu0 %v260_v37  ;;  %v215_v43 = vpop.f32.mrb[3].mxu1  ;;  %270 = vadd.xlane.f32.xlu1 %v252_v38  ;;  %v183_v44 = vpop.f32.mrb[3].mxu0  ;;  %v253_v48 = vmul.f32 %v552_v39, %v437_v32 }
 0x131   :  { %v493_v45 = vpack.c.bf16 %v215_v43, %v212_v36  ;;  %v473_v46 = vpack.c.bf16 %v183_v44, %v180_v35  ;;  %v261_v52 = vmul.f32 %v560_v40, %v437_v32  ;;  %v259_v63 = vmul.f32 %v437_v32, %v215_v43 }
 0x132   :  { %510 = vst [vmem:[#allocation8 + $0x8] sm:$0xff] %v478_v41   ;;  %514 = vst [vmem:[#allocation8 + $0x28] sm:$0xff] %v498_v42   ;;  %v251_v0 = vmul.f32 %v437_v32, %v183_v44 }
 0x133   :  { %513 = vst [vmem:[#allocation8 + $0x20] sm:$0xff] %v493_v45   ;;  %474 = vst [vmem:[#allocation8] sm:$0xff] %v473_v46  }
 0x134   :  { %266 = vadd.xlane.f32.xlu0 %v250_v47  ;;  %272 = vadd.xlane.f32.xlu1 %v253_v48 }
 0x135   :  { %v555_v49 = vpop.f32.mrb[4].mxu0  ;;  %v563_v50 = vpop.f32.mrb[4].mxu1 }
 0x136   :  { %v196_v53 = vpop.f32.mrb[5].mxu0  ;;  %v228_v54 = vpop.f32.mrb[5].mxu1  ;;  %v256_v1 = vmul.f32 %v555_v49, %v437_v32  ;;  %v264_v7 = vmul.f32 %v563_v50, %v437_v32 }
 0x137   :  { %v556_v55 = vpop.f32.mrb[6].mxu0  ;;  %v564_v56 = vpop.f32.mrb[6].mxu1  ;;  %v254_v4 = vmul.f32 %v437_v32, %v196_v53  ;;  %v262_v6 = vmul.f32 %v437_v32, %v228_v54 }
 0x138   :  { %282 = vadd.xlane.f32.xlu0 %v258_v51  ;;  %288 = vadd.xlane.f32.xlu1 %v261_v52  ;;  %v488_v57 = vpack.c.bf16 %v556_v55, %v555_v49  ;;  %v199_v58 = vpop.f32.mrb[7].mxu0  ;;  %v508_v59 = vpack.c.bf16 %v564_v56, %v563_v50  ;;  %v231_v60 = vpop.f32.mrb[7].mxu1  ;;  %v257_v2 = vmul.f32 %v556_v55, %v437_v32 }
 0x139   :  { %v483_v61 = vpack.c.bf16 %v199_v58, %v196_v53  ;;  %v503_v62 = vpack.c.bf16 %v231_v60, %v228_v54  ;;  %v255_v3 = vmul.f32 %v437_v32, %v199_v58  ;;  %v263_v5 = vmul.f32 %v437_v32, %v231_v60 }
 0x13a   :  { %512 = vst [vmem:[#allocation8 + $0x18] sm:$0xff] %v488_v57   ;;  %516 = vst [vmem:[#allocation8 + $0x38] sm:$0xff] %v508_v59   ;;  %v265_v8 = vmul.f32 %v564_v56, %v437_v32 }
 0x13b   :  { %511 = vst [vmem:[#allocation8 + $0x10] sm:$0xff] %v483_v61   ;;  %515 = vst [vmem:[#allocation8 + $0x30] sm:$0xff] %v503_v62  }
 0x13c   :  { %284 = vadd.xlane.f32.xlu1 %v259_v63  ;;  %268 = vadd.xlane.f32.xlu0 %v251_v0 }
 0x140   :  { %278 = vadd.xlane.f32.xlu0 %v256_v1  ;;  %280 = vadd.xlane.f32.xlu1 %v257_v2 }
 0x144   :  { %274 = vadd.xlane.f32.xlu0 %v254_v4  ;;  %276 = vadd.xlane.f32.xlu1 %v255_v3 }
 0x148   :  { %290 = vadd.xlane.f32.xlu0 %v262_v6  ;;  %292 = vadd.xlane.f32.xlu1 %v263_v5 }
 0x14c   :  { %294 = vadd.xlane.f32.xlu0 %v264_v7  ;;  %296 = vadd.xlane.f32.xlu1 %v265_v8 }
 0x14d   :  { %675 = shalt.err (!%p672_p0)
}
 0x14e   :  { %s676_s8 = scalar_lea.hbm %s841_s3, 1024 }
 0x14f   :  { %p677_p1 = scmp.ne.s32.totalorder %s841_s3, %s676_s8  ;;  %p680_p2 = scmp.lt.u32.totalorder %s676_s8, %s841_s3 }
 0x151   :  { %p682_p3 = pnand %p680_p2, %p677_p1 }
 0x153   :  { %685 = shalt.err (!%p682_p3)
}
 0x154   :  { %406 = dma.vmem_to_hbm [thread:$0]  %s401_s30, 1024, %s841_s3, [#allocation4], %s717_s25, %s717_s25, %s718_s26   ;;  %vm298_vm0 = vcmask 7168  }
 0x155   :  { %s724_s3 = smov [#allocation9]  }
 0x156   :  { %s412_s25 = sshll.u32 %s724_s3, 4  ;;  %s413_s25 = int_to_ptr.vmem [resolvable:$true] %s412_s25 }
 0x157   :  { %s686_s26 = scalar_lea.vmem %s413_s25, 2048  ;;  %p691_p5 = scmp.lt.s32.totalorder %s413_s25, %s413_s25 }
 0x158   :  { %p687_p4 = scmp.ne.s32.totalorder %s413_s25, %s686_s26  ;;  %p692_p6 = scmp.lt.s32.totalorder %s686_s26, %s686_s26 }
 0x15a   :  { %p693_p7 = por %p692_p6, %p691_p5 }
 0x15c   :  { %p694_p8 = pnand %p693_p7, %p687_p4 }
 0x1bd   :  { %v287_v9 = vpop.xlane.xlu0 %286  ;;  %v271_v10 = vpop.xlane.xlu1 %270 }
 0x1be   :  { %309 = vst.msk [vmem:[#allocation9 + $0x50] sm:$0xff] %vm298_vm0, %v287_v9  ;;  %301 = vst.msk [vmem:[#allocation9 + $0x10] sm:$0xff] %vm298_vm0, %v271_v10 }
 0x1c1   :  { %v267_v11 = vpop.xlane.xlu0 %266  ;;  %v273_v12 = vpop.xlane.xlu1 %272 }
 0x1c2   :  { %299 = vst.msk [vmem:[#allocation9] sm:$0xff] %vm298_vm0, %v267_v11  ;;  %302 = vst.msk [vmem:[#allocation9 + $0x18] sm:$0xff] %vm298_vm0, %v273_v12 }
 0x1c5   :  { %v283_v13 = vpop.xlane.xlu0 %282  ;;  %v289_v14 = vpop.xlane.xlu1 %288 }
 0x1c6   :  { %307 = vst.msk [vmem:[#allocation9 + $0x40] sm:$0xff] %vm298_vm0, %v283_v13  ;;  %310 = vst.msk [vmem:[#allocation9 + $0x58] sm:$0xff] %vm298_vm0, %v289_v14 }
 0x1c9   :  { %v285_v15 = vpop.xlane.xlu1 %284  ;;  %v269_v16 = vpop.xlane.xlu0 %268 }
 0x1ca   :  { %308 = vst.msk [vmem:[#allocation9 + $0x48] sm:$0xff] %vm298_vm0, %v285_v15  ;;  %300 = vst.msk [vmem:[#allocation9 + $0x8] sm:$0xff] %vm298_vm0, %v269_v16 }
 0x1cd   :  { %v279_v17 = vpop.xlane.xlu0 %278  ;;  %v281_v18 = vpop.xlane.xlu1 %280 }
 0x1ce   :  { %305 = vst.msk [vmem:[#allocation9 + $0x30] sm:$0xff] %vm298_vm0, %v279_v17  ;;  %306 = vst.msk [vmem:[#allocation9 + $0x38] sm:$0xff] %vm298_vm0, %v281_v18 }
 0x1d1   :  { %v275_v19 = vpop.xlane.xlu0 %274  ;;  %v277_v20 = vpop.xlane.xlu1 %276 }
 0x1d2   :  { %303 = vst.msk [vmem:[#allocation9 + $0x20] sm:$0xff] %vm298_vm0, %v275_v19  ;;  %304 = vst.msk [vmem:[#allocation9 + $0x28] sm:$0xff] %vm298_vm0, %v277_v20 }
 0x1d5   :  { %v291_v21 = vpop.xlane.xlu0 %290  ;;  %v293_v22 = vpop.xlane.xlu1 %292 }
 0x1d6   :  { %311 = vst.msk [vmem:[#allocation9 + $0x60] sm:$0xff] %vm298_vm0, %v291_v21  ;;  %312 = vst.msk [vmem:[#allocation9 + $0x68] sm:$0xff] %vm298_vm0, %v293_v22 }
 0x1d9   :  { %v295_v23 = vpop.xlane.xlu0 %294  ;;  %v297_v24 = vpop.xlane.xlu1 %296 }
 0x1da   :  { %313 = vst.msk [vmem:[#allocation9 + $0x70] sm:$0xff] %vm298_vm0, %v295_v23  ;;  %314 = vst.msk [vmem:[#allocation9 + $0x78] sm:$0xff] %vm298_vm0, %v297_v24 }
 0x1db   :  { %697 = shalt.err (!%p694_p8)
}
 0x1dc   :  { %s698_s18 = scalar_lea.hbm %s842_s4, 2048 }
 0x1dd   :  { %p699_p9 = scmp.ne.s32.totalorder %s842_s4, %s698_s18  ;;  %p702_p10 = scmp.lt.u32.totalorder %s698_s18, %s842_s4 }
 0x1df   :  { %p704_p11 = pnand %p702_p10, %p699_p9 }
 0x1e1   :  { %707 = shalt.err (!%p704_p11)
}
 0x1e2   :  { %418 = dma.vmem_to_hbm [thread:$0]  %s413_s25, 2048, %s842_s4, [#allocation10], %s720_s1, %s720_s1, %s721_s13  }
 0x1e3   :  { %712 = dma.done.wait [#allocation4], 1024  }
 0x1e4   :  { %713 = vsyncadd [#allocation4], 4294966272 }
 0x1e5   :  { %714 = dma.done.wait [#allocation10], 2048  }
 0x1e6   :  { %715 = vsyncadd [#allocation10], 4294965248 }
 0x1e7   :  { %425 = vsyncpa [#allocation3], 1 }
 0x1e8   :  { %426 = vsyncpa [#allocation6], 1 }
 0x1e9   :  { %427 = vsyncpa [#allocation4], 1 }
 0x1ea   :  { %428 = vsyncpa [#allocation10], 1 }

</bundles_post_ra>
